<compile_context>
chip_gen: v7x
topology: tpu7x:2x2x1
jax: 0.10.0
libtpu: 0.0.40
codegen_flags: <defaults>
</compile_context>

<pallas_src>
import jax
import jax.numpy as jnp
from jax import lax
from jax.experimental import pallas as pl
from jax.experimental.pallas import tpu as pltpu


# ---------------------------------------------------------------------------
# Kernel 1: preprocess_image  ->  x * scale + bias   (scale = 1/std, bias = -mean/std)
# Divide is replaced by an FMA (stays on the VPU; no EUP reciprocal per element).
# ---------------------------------------------------------------------------
def _normalize_kernel(x_ref, scale_ref, bias_ref, o_ref):
    o_ref[...] = x_ref[...] * scale_ref[...] + bias_ref[...]


def _pick_lane_tile(s, max_lanes=2048):
    """Largest multiple of 128 that divides s and is <= max_lanes (else full s)."""
    if s <= max_lanes:
        return s
    t = (max_lanes // 128) * 128
    while t >= 128:
        if s % t == 0:
            return t
        t -= 128
    return s


def preprocess_image(images, pixel_mean, pixel_std):
    B, C, H, W = images.shape
    S = H * W
    x = images.reshape(B * C, S)

    # Fold mean/std into per-row scale/bias (tiny (B*C, 1) operands; their
    # index_map is constant so they are fetched into VMEM only once).
    scale = (1.0 / pixel_std).reshape(C, 1)
    bias = (-pixel_mean / pixel_std).reshape(C, 1)
    scale_rows = jnp.tile(scale, (B, 1))
    bias_rows = jnp.tile(bias, (B, 1))

    T = _pick_lane_tile(S)
    grid = (S // T,)

    out = pl.pallas_call(
        _normalize_kernel,
        out_shape=jax.ShapeDtypeStruct((B * C, S), images.dtype),
        grid=grid,
        in_specs=[
            pl.BlockSpec((B * C, T), lambda i: (0, i)),
            pl.BlockSpec((B * C, 1), lambda i: (0, 0)),
            pl.BlockSpec((B * C, 1), lambda i: (0, 0)),
        ],
        out_specs=pl.BlockSpec((B * C, T), lambda i: (0, i)),
        # Mirrors the in-place sub_/div_ semantics: output reuses the input buffer.
        input_output_aliases={0: 0},
        compiler_params=pltpu.CompilerParams(
            dimension_semantics=("parallel",)
        ),
    )(x, scale_rows, bias_rows)
    return out.reshape(B, C, H, W)


# ---------------------------------------------------------------------------
# Kernel 2: input_proj = nn.Conv2d(IN_FEAT, hidden_dim, kernel_size=1)
# One matmul for the whole batch: out = W @ X + b, X: (Cin, B*H*W) (lane-dense).
# ---------------------------------------------------------------------------
def _conv1x1_kernel(x_ref, w_ref, b_ref, o_ref):
    # x_ref: (Cin, B*S), w_ref: (Cout, Cin), b_ref: (Cout, 1)
    o_ref[...] = (
        jnp.dot(w_ref[...], x_ref[...], preferred_element_type=jnp.float32)
        + b_ref[...]
    )


def input_proj(feat, w, b):
    B, Cin, Hf, Wf = feat.shape
    S = Hf * Wf
    Cout = w.shape[0]
    # NCHW -> (Cin, B*S): tiny XLA transpose, buys a lane-dense (Cout, B*S) matmul.
    x = jnp.transpose(feat, (1, 0, 2, 3)).reshape(Cin, B * S)
    out = pl.pallas_call(
        _conv1x1_kernel,
        out_shape=jax.ShapeDtypeStruct((Cout, B * S), jnp.float32),
    )(x, w, b.reshape(Cout, 1))
    return jnp.transpose(out.reshape(Cout, B, Hf, Wf), (1, 0, 2, 3))


# ---------------------------------------------------------------------------
# Kernel 3 (fused): class_embed (Linear) + local_bns (BatchNorm1d affine=False)
# patch_features is consumed once; two contiguity-only views of the same HBM
# buffer are passed in:
#   x2d   = (B*P, Hd)   for the logits matmul
#   xflat = (B, P*Hd)   lane-dense (128 lanes) for the per-(patch,feature)
#                       batch-norm reduction over the batch axis.
# ---------------------------------------------------------------------------
def _patch_fused_kernel(x2d_ref, xflat_ref, wT_ref, b_ref, logits_ref, bn_ref):
    # class_embed: (B*P, Hd) @ (Hd, P_out) + (1, P_out)
    logits_ref[...] = (
        jnp.dot(x2d_ref[...], wT_ref[...], preferred_element_type=jnp.float32)
        + b_ref[...]
    )
    # local BN (training-mode stats, biased variance, eps=1e-5, no affine):
    # per-column mean/var over the batch axis of the flattened (B, P*Hd) view.
    xf = xflat_ref[...]
    mean = jnp.mean(xf, axis=0, keepdims=True)
    var = jnp.mean((xf - mean) ** 2, axis=0, keepdims=True)
    bn_ref[...] = (xf - mean) * lax.rsqrt(var + 1e-5)


def patch_head(patch_feats, w_cls, b_cls):
    B, P, Hd = patch_feats.shape
    P_out = w_cls.shape[0]
    x2d = patch_feats.reshape(B * P, Hd)      # free reshape (row-major)
    xflat = patch_feats.reshape(B, P * Hd)    # free reshape (row-major)
    logits2d, bn_flat = pl.pallas_call(
        _patch_fused_kernel,
        out_shape=(
            jax.ShapeDtypeStruct((B * P, P_out), jnp.float32),
            jax.ShapeDtypeStruct((B, P * Hd), jnp.float32),
        ),
    )(x2d, xflat, w_cls.T, b_cls.reshape(1, P_out))
    return logits2d.reshape(B, P, P_out), bn_flat


# ---------------------------------------------------------------------------
# Baseline forward (the parts owned by this module)
# ---------------------------------------------------------------------------
def baseline_forward(images, local_feat_map, patch_features, params):
    imgs_n = preprocess_image(images, params["pixel_mean"], params["pixel_std"])
    # TODO(synk): backbone / heads / positional_encoder / transformer / CVAE /
    # distance_loss are built from external registries with no definitions in
    # this module; `local_feat_map` and `patch_features` stand in for the
    # heads / transformer outputs they would produce.
    proj = input_proj(local_feat_map, params["w_proj"], params["b_proj"])
    logits, local_bn_feat = patch_head(
        patch_features, params["w_cls"], params["b_cls"]
    )
    B, P, Hd = patch_features.shape
    local_feat = patch_features.reshape(B, P * Hd)  # torch.cat(local_feat_list, 1)
    return imgs_n, proj, logits, local_feat, local_bn_feat


if __name__ == "__main__":
    key = jax.random.PRNGKey(0)
    B, C, H, W = 2, 3, 16, 16          # input images (NCHW)
    IN_FEAT = 16                       # cfg.MODEL.HEADS.IN_FEAT (small)
    HIDDEN = 32                        # cfg.MODEL.Transformer.hidden_dim
    NUM_PATCH = 4                      # cfg.MODEL.Transformer.num_patch
    Hf = Wf = 8                        # backbone feature map spatial size

    keys = jax.random.split(key, 8)
    images = jax.random.uniform(keys[0], (B, C, H, W), jnp.float32) * 255.0

    params = {
        "pixel_mean": jnp.array([123.675, 116.28, 103.53], jnp.float32),
        "pixel_std": jnp.array([58.395, 57.12, 57.375], jnp.float32),
        # input_proj: Conv2d(IN_FEAT, HIDDEN, 1)
        "w_proj": jax.random.normal(keys[1], (HIDDEN, IN_FEAT), jnp.float32) * 0.02,
        "b_proj": jnp.zeros((HIDDEN,), jnp.float32),
        # class_embed: Linear(HIDDEN, NUM_PATCH)
        "w_cls": jax.random.normal(keys[2], (NUM_PATCH, HIDDEN), jnp.float32) * 0.02,
        "b_cls": jnp.zeros((NUM_PATCH,), jnp.float32),
        # query_embed: Embedding(NUM_PATCH, HIDDEN) — consumed by the
        # (untranslated) transformer, initialized here for completeness.
        "query_embed": jax.random.normal(keys[3], (NUM_PATCH, HIDDEN), jnp.float32),
    }

    # Stand-ins for external-module outputs (see TODO above).
    local_feat_map = jax.random.normal(keys[4], (B, IN_FEAT, Hf, Wf), jnp.float32)
    patch_features = jax.random.normal(keys[5], (B, NUM_PATCH, HIDDEN), jnp.float32)

    fwd = jax.jit(baseline_forward)
    outs = fwd(images, local_feat_map, patch_features, params)
    for t in outs:
        jax.block_until_ready(t)
    print("KERNEL_OK")
</pallas_src>

<mosaic_0001>
module attributes {stable_mosaic.version = 11 : i64} {
  func.func @_normalize_kernel(%arg0: i32, %arg1: memref<6x256xf32, #tpu.memory_space<vmem>>, %arg2: memref<6x1xf32, #tpu.memory_space<vmem>>, %arg3: memref<6x1xf32, #tpu.memory_space<vmem>>, %arg4: memref<6x256xf32, #tpu.memory_space<vmem>>) attributes {dimension_semantics = [#tpu.dimension_semantics<parallel>], iteration_bounds = array<i64: 1>, scalar_prefetch = 0 : i64, scratch_operands = 0 : i64, tpu.core_type = #tpu.core_type<tc>, window_params = [{transform_indices = @transform_0, window_bounds = array<i64: 6, 256>}, {pipeline_mode = #tpu.pipeline_mode<synchronous>, transform_indices = @transform_1, window_bounds = array<i64: 6, 1>}, {pipeline_mode = #tpu.pipeline_mode<synchronous>, transform_indices = @transform_2, window_bounds = array<i64: 6, 1>}, {transform_indices = @transform_3, window_bounds = array<i64: 6, 256>}]} {
    %c0 = arith.constant 0 : index
    %c0_0 = arith.constant 0 : index
    %0 = vector.load %arg1[%c0, %c0_0] : memref<6x256xf32, #tpu.memory_space<vmem>>, vector<6x256xf32>
    %c0_1 = arith.constant 0 : index
    %c0_2 = arith.constant 0 : index
    %1 = vector.load %arg2[%c0_1, %c0_2] : memref<6x1xf32, #tpu.memory_space<vmem>>, vector<6x1xf32>
    %2 = vector.broadcast %1 : vector<6x1xf32> to vector<6x256xf32>
    %3 = arith.mulf %0, %2 : vector<6x256xf32>
    %c0_3 = arith.constant 0 : index
    %c0_4 = arith.constant 0 : index
    %4 = vector.load %arg3[%c0_3, %c0_4] : memref<6x1xf32, #tpu.memory_space<vmem>>, vector<6x1xf32>
    %5 = vector.broadcast %4 : vector<6x1xf32> to vector<6x256xf32>
    %6 = arith.addf %3, %5 : vector<6x256xf32>
    %c0_5 = arith.constant 0 : index
    %c0_6 = arith.constant 0 : index
    %7 = vector.load %arg4[%c0_5, %c0_6] : memref<6x256xf32, #tpu.memory_space<vmem>>, vector<6x256xf32>
    tpu.vector_store %arg4[%c0_5, %c0_6], %6 {strides = array<i32>} : memref<6x256xf32, #tpu.memory_space<vmem>>, vector<6x256xf32>,
    return
  }
  func.func @transform_0(%arg0: i32) -> (i32, i32) {
    %c0_i32 = arith.constant 0 : i32
    %c0_i32_0 = arith.constant 0 : i32
    return %c0_i32, %arg0 : i32, i32
  }
  func.func @transform_1(%arg0: i32) -> (i32, i32) {
    %c0_i32 = arith.constant 0 : i32
    %c0_i32_0 = arith.constant 0 : i32
    %c0_i32_1 = arith.constant 0 : i32
    return %c0_i32, %c0_i32_0 : i32, i32
  }
  func.func @transform_2(%arg0: i32) -> (i32, i32) {
    %c0_i32 = arith.constant 0 : i32
    %c0_i32_0 = arith.constant 0 : i32
    %c0_i32_1 = arith.constant 0 : i32
    return %c0_i32, %c0_i32_0 : i32, i32
  }
  func.func @transform_3(%arg0: i32) -> (i32, i32) {
    %c0_i32 = arith.constant 0 : i32
    %c0_i32_0 = arith.constant 0 : i32
    return %c0_i32, %arg0 : i32, i32
  }
}

module attributes {stable_mosaic.version = 11 : i64} {
  func.func @_patch_fused_kernel(%arg0: memref<8x32xf32, #tpu.memory_space<vmem>>, %arg1: memref<2x128xf32, #tpu.memory_space<vmem>>, %arg2: memref<32x4xf32, #tpu.memory_space<vmem>>, %arg3: memref<1x4xf32, #tpu.memory_space<vmem>>, %arg4: memref<8x4xf32, #tpu.memory_space<vmem>>, %arg5: memref<2x128xf32, #tpu.memory_space<vmem>>) attributes {dimension_semantics = [], scalar_prefetch = 0 : i64, scratch_operands = 0 : i64, tpu.core_type = #tpu.core_type<tc>} {
    %c0 = arith.constant 0 : index
    %c0_0 = arith.constant 0 : index
    %0 = vector.load %arg0[%c0, %c0_0] : memref<8x32xf32, #tpu.memory_space<vmem>>, vector<8x32xf32>
    %c0_1 = arith.constant 0 : index
    %c0_2 = arith.constant 0 : index
    %1 = vector.load %arg2[%c0_1, %c0_2] : memref<32x4xf32, #tpu.memory_space<vmem>>, vector<32x4xf32>
    %cst = arith.constant dense<0.000000e+00> : vector<8x4xf32>
    %2 = tpu.matmul %0, %1, %cst {dimension_numbers = #tpu.dot_dimension_numbers<[1], [0], [0], [1], [0, 0, 1, 1], [], []>} : vector<8x32xf32>, vector<32x4xf32>, vector<8x4xf32> -> vector<8x4xf32>
    %c0_3 = arith.constant 0 : index
    %c0_4 = arith.constant 0 : index
    %3 = vector.load %arg3[%c0_3, %c0_4] : memref<1x4xf32, #tpu.memory_space<vmem>>, vector<1x4xf32>
    %4 = vector.broadcast %3 : vector<1x4xf32> to vector<8x4xf32>
    %5 = arith.addf %2, %4 : vector<8x4xf32>
    %c0_5 = arith.constant 0 : index
    %c0_6 = arith.constant 0 : index
    %6 = vector.load %arg4[%c0_5, %c0_6] : memref<8x4xf32, #tpu.memory_space<vmem>>, vector<8x4xf32>
    tpu.vector_store %arg4[%c0_5, %c0_6], %5 {strides = array<i32>} : memref<8x4xf32, #tpu.memory_space<vmem>>, vector<8x4xf32>,
    %c0_7 = arith.constant 0 : index
    %c0_8 = arith.constant 0 : index
    %7 = vector.load %arg1[%c0_7, %c0_8] : memref<2x128xf32, #tpu.memory_space<vmem>>, vector<2x128xf32>
    %cst_9 = arith.constant dense<0.000000e+00> : vector<128xf32>
    %8 = vector.multi_reduction <add>, %7, %cst_9 [0] : vector<2x128xf32> to vector<128xf32>
    %9 = vector.shape_cast %8 : vector<128xf32> to vector<1x128xf32>
    %cst_10 = arith.constant 2.000000e+00 : f32
    %10 = vector.broadcast %cst_10 : f32 to vector<1x128xf32>
    %11 = arith.divf %9, %10 : vector<1x128xf32>
    %12 = vector.broadcast %11 : vector<1x128xf32> to vector<2x128xf32>
    %13 = arith.subf %7, %12 : vector<2x128xf32>
    %14 = arith.mulf %13, %13 : vector<2x128xf32>
    %cst_11 = arith.constant dense<0.000000e+00> : vector<128xf32>
    %15 = vector.multi_reduction <add>, %14, %cst_11 [0] : vector<2x128xf32> to vector<128xf32>
    %16 = vector.shape_cast %15 : vector<128xf32> to vector<1x128xf32>
    %cst_12 = arith.constant 2.000000e+00 : f32
    %17 = vector.broadcast %cst_12 : f32 to vector<1x128xf32>
    %18 = arith.divf %16, %17 : vector<1x128xf32>
    %19 = vector.broadcast %11 : vector<1x128xf32> to vector<2x128xf32>
    %20 = arith.subf %7, %19 : vector<2x128xf32>
    %cst_13 = arith.constant 9.99999974E-6 : f32
    %21 = vector.broadcast %cst_13 : f32 to vector<1x128xf32>
    %22 = arith.addf %18, %21 : vector<1x128xf32>
    %23 = math.rsqrt %22 : vector<1x128xf32>
    %24 = vector.broadcast %23 : vector<1x128xf32> to vector<2x128xf32>
    %25 = arith.mulf %20, %24 : vector<2x128xf32>
    %c0_14 = arith.constant 0 : index
    %c0_15 = arith.constant 0 : index
    %26 = vector.load %arg5[%c0_14, %c0_15] : memref<2x128xf32, #tpu.memory_space<vmem>>, vector<2x128xf32>
    tpu.vector_store %arg5[%c0_14, %c0_15], %25 {strides = array<i32>} : memref<2x128xf32, #tpu.memory_space<vmem>>, vector<2x128xf32>,
    return
  }
}

module attributes {stable_mosaic.version = 11 : i64} {
  func.func @_conv1x1_kernel(%arg0: memref<16x128xf32, #tpu.memory_space<vmem>>, %arg1: memref<32x16xf32, #tpu.memory_space<vmem>>, %arg2: memref<32x1xf32, #tpu.memory_space<vmem>>, %arg3: memref<32x128xf32, #tpu.memory_space<vmem>>) attributes {dimension_semantics = [], scalar_prefetch = 0 : i64, scratch_operands = 0 : i64, tpu.core_type = #tpu.core_type<tc>} {
    %c0 = arith.constant 0 : index
    %c0_0 = arith.constant 0 : index
    %0 = vector.load %arg1[%c0, %c0_0] : memref<32x16xf32, #tpu.memory_space<vmem>>, vector<32x16xf32>
    %c0_1 = arith.constant 0 : index
    %c0_2 = arith.constant 0 : index
    %1 = vector.load %arg0[%c0_1, %c0_2] : memref<16x128xf32, #tpu.memory_space<vmem>>, vector<16x128xf32>
    %cst = arith.constant dense<0.000000e+00> : vector<32x128xf32>
    %2 = tpu.matmul %0, %1, %cst {dimension_numbers = #tpu.dot_dimension_numbers<[1], [0], [0], [1], [0, 0, 1, 1], [], []>} : vector<32x16xf32>, vector<16x128xf32>, vector<32x128xf32> -> vector<32x128xf32>
    %c0_3 = arith.constant 0 : index
    %c0_4 = arith.constant 0 : index
    %3 = vector.load %arg2[%c0_3, %c0_4] : memref<32x1xf32, #tpu.memory_space<vmem>>, vector<32x1xf32>
    %4 = vector.broadcast %3 : vector<32x1xf32> to vector<32x128xf32>
    %5 = arith.addf %2, %4 : vector<32x128xf32>
    %c0_5 = arith.constant 0 : index
    %c0_6 = arith.constant 0 : index
    %6 = vector.load %arg3[%c0_5, %c0_6] : memref<32x128xf32, #tpu.memory_space<vmem>>, vector<32x128xf32>
    tpu.vector_store %arg3[%c0_5, %c0_6], %5 {strides = array<i32>} : memref<32x128xf32, #tpu.memory_space<vmem>>, vector<32x128xf32>,
    return
  }
}

</mosaic_0001>

<bundles_post_ra>
// kernel: baseline_forward.3
= control target key start
LH: loop header
LB: loop body
LE: loop exit
PB: predicated region body
PF: predicated region fallthrough
CT: control target
= control target key end

     0   :  { %v40_v0 = vmov 0   ;;  %s79_s1 = inlined_call_operand.vmem [shape: f32[6,1], index: 1, kind: input, shape index: {}]   ;;  %s80_s2 = inlined_call_operand.vmem [shape: f32[6,1], index: 2, kind: input, shape index: {}]   ;;  %s81_s0 = inlined_call_operand.vmem [shape: f32[6,256], index: 0, kind: input, shape index: {}, may-alias: {0,3}]   ;;  %s82_s3 = inlined_call_operand.vmem [shape: f32[6,256], index: 3, kind: output, shape index: {}, may-alias: {0,3}]  }
   0x1   :  { %39 = vset.pattern.permute.xlu0 %v40_v0  ;;  %v16_v1 = vld [vmem:[%s79_s1] sm:$0x3f]  ;;  %v15_v5 = vld [vmem:[%s81_s0 + $0x8] sm:$0x3f] }
   0x2   :  { %19 = vperm.xlu0 %39, %v16_v1   ;;  %v24_v2 = vld [vmem:[%s80_s2] sm:$0x3f] }
   0x3   :  { %v14_v4 = vld [vmem:[%s81_s0] sm:$0x3f] }
   0x6   :  { %27 = vperm.xlu0 %39, %v24_v2  }
  0x81   :  { %v20_v3 = vpop.permute.xlu0 %19 }
  0x82   :  { %v22_v6 = vmul.f32 %v20_v3, %v14_v4  ;;  %v23_v7 = vmul.f32 %v20_v3, %v15_v5 }
  0x85   :  { %v28_v8 = vpop.permute.xlu0 %27 }
  0x86   :  { %v30_v9 = vadd.f32 %v28_v8, %v22_v6  ;;  %v31_v10 = vadd.f32 %v28_v8, %v23_v7 }
  0x88   :  { %32 = vst [vmem:[%s82_s3] sm:$0x3f] %v30_v9  ;;  %33 = vst [vmem:[%s82_s3 + $0x8] sm:$0x3f] %v31_v10 }

// kernel: baseline_forward.5
= control target key start
LH: loop header
LB: loop body
LE: loop exit
PB: predicated region body
PF: predicated region fallthrough
CT: control target
= control target key end

     0   :  { %11 = vsyncpa [#allocation3], 0  ;;  %v241_v3 = vmov 0.0|0.0   ;;  %vm242_vm0 = vmmov 0   ;;  %v243_v6 = vmov 0.0   ;;  %s321_s0 = inlined_call_operand.vmem [shape: f32[8,32], index: 0, kind: input, shape index: {}]   ;;  %s322_s1 = inlined_call_operand.vmem [shape: f32[2,128], index: 1, kind: input, shape index: {}]   ;;  %s323_s2 = inlined_call_operand.vmem [shape: f32[32,4], index: 2, kind: input, shape index: {}]   ;;  %s324_s3 = inlined_call_operand.vmem [shape: f32[1,4], index: 3, kind: input, shape index: {}]   ;;  %s325_s4 = inlined_call_operand.hbm [shape: f32[8,4], index: 4, kind: output, shape index: {0}]   ;;  %s326_s5 = inlined_call_operand.hbm [shape: f32[2,128], index: 5, kind: output, shape index: {1}]  }
   0x1   :  { %v22_v0 = vld [vmem:[%s323_s2] sm:$0xff]  ;;  %v23_v1 = vld [vmem:[%s323_s2 + $0x8] sm:$0xff]  ;;  %v24_v2 = vld [vmem:[%s323_s2 + $0x10] sm:$0xff]  ;;  %180 = vmatprep.subr.bf16.mxu0 %v241_v3  ;;  %177 = vmatprep.mubr.msk.f32.mxu0 %vm242_vm0, %v243_v6 }
   0x2   :  { %v181_v4 = vpack.c.bf16 %v23_v1, %v22_v0  ;;  %v25_v5 = vld [vmem:[%s323_s2 + $0x18] sm:$0xff] }
   0x3   :  { %12 = vsyncpa [#allocation5], 0  ;;  %v184_v7 = vpack.c.bf16 %v25_v5, %v24_v2  ;;  %v21_v8 = vld [vmem:[%s321_s0] sm:$0xff]  ;;  %vm33_vm1 = vcmask 261120   ;;  %vm110_vm2 = vcmask 1041408   ;;  %s244_s0 = smov [#allocation4]  }
   0x4   :  { %182 = vmatpush3.bf16.msra.mxu0 %v181_v4  ;;  %v109_v9 = vld [vmem:[%s322_s1] sm:$0x3]  ;;  %s150_s1 = sshll.u32 %s244_s0, 4  ;;  %s151_s1 = int_to_ptr.vmem [resolvable:$true] %s150_s1 }
   0x5   :  { %183 = vmatprep.subr.bf16.mxu0 %v241_v3  ;;  %v111_v10 = vsel %vm110_vm2, %v109_v9, 0.0  ;;  %s193_s2 = scalar_lea.vmem %s151_s1, 32  ;;  %p198_p1 = scmp.lt.s32.totalorder %s151_s1, %s151_s1 }
   0x6   :  { %v112_v11 = vrot.slane %v111_v10, 4  ;;  %p194_p0 = scmp.ne.s32.totalorder %s151_s1, %s193_s2  ;;  %p199_p2 = scmp.lt.s32.totalorder %s193_s2, %s193_s2 }
   0x8   :  { %185 = vmatpush3.bf16.msra.mxu0 %v184_v7  ;;  %v113_v12 = vadd.f32 %v112_v11, %v111_v10  ;;  %p200_p3 = por %p199_p2, %p198_p1 }
   0xa   :  { %v114_v13 = vrot.slane %v113_v12, 2  ;;  %p201_p4 = pnand %p200_p3, %p194_p0 }
   0xb   :  { %178 = vmatmul.mubr.msk.f32.vlgmr.msra.gmra.mrb[0].mxu0 %vm33_vm1, %v21_v8 }
   0xc   :  { %v115_v14 = vadd.f32 %v114_v13, %v113_v12 }
   0xe   :  { %v116_v15 = vrot.slane %v115_v14, 1 }
  0x10   :  { %v117_v16 = vadd.f32 %v116_v15, %v115_v14 }
  0x12   :  { %v119_v17 = vmul.f32 0.5, %v117_v16 }
  0x14   :  { %v120_v18 = vsub.f32 %v109_v9, %v119_v17 }
  0x16   :  { %v121_v19 = vmul.f32 %v120_v18, %v120_v18 }
  0x18   :  { %v122_v20 = vsel %vm110_vm2, %v121_v19, 0.0 }
  0x19   :  { %v123_v21 = vrot.slane %v122_v20, 4 }
  0x1b   :  { %v124_v22 = vadd.f32 %v123_v21, %v122_v20 }
  0x1d   :  { %v125_v23 = vrot.slane %v124_v22, 2 }
  0x1f   :  { %v126_v24 = vadd.f32 %v125_v23, %v124_v22 }
  0x21   :  { %v127_v25 = vrot.slane %v126_v24, 1 }
  0x23   :  { %v128_v26 = vadd.f32 %v127_v25, %v126_v24 }
  0x25   :  { %v129_v27 = vmul.f32 0.5, %v128_v26 }
  0x27   :  { %v130_v28 = vadd.f32 1e-05, %v129_v27 }
  0x29   :  { %191 = vrsqrt.f32 %v130_v28 }
  0x33   :  { %v192_v29 = vpop.eup %191 }
  0x34   :  { %v132_v30 = vmul.f32 %v192_v29, %v120_v18 }
  0x36   :  { %133 = vst [vmem:[#allocation4] sm:$0x3] %v132_v30 }
  0x37   :  { %204 = shalt.err (!%p201_p4)
}
  0x38   :  { %s205_s7 = scalar_lea.hbm %s326_s5, 32 }
  0x39   :  { %p206_p5 = scmp.ne.s32.totalorder %s326_s5, %s205_s7  ;;  %p209_p6 = scmp.lt.u32.totalorder %s205_s7, %s326_s5 }
  0x3b   :  { %p211_p7 = pnand %p209_p6, %p206_p5 }
  0x3d   :  { %214 = shalt.err (!%p211_p7)
}
  0x3e   :  { %153 = dma.vmem_to_hbm [thread:$0]  %s151_s1, 32, %s326_s5, [#allocation5]   ;;  %v162_v31 = vld [vmem:[%s324_s3] ss:$0 sm:$0xff]  ;;  %vm107_vm3 = vcmask 31744  }
  0x3f   :  { %s245_s16 = smov [#allocation2]  }
  0x40   :  { %s140_s17 = sshll.u32 %s245_s16, 4  ;;  %s141_s17 = int_to_ptr.vmem [resolvable:$true] %s140_s17 }
  0x41   :  { %s215_s18 = scalar_lea.vmem %s141_s17, 128  ;;  %p220_p9 = scmp.lt.s32.totalorder %s141_s17, %s141_s17 }
  0x42   :  { %p216_p8 = scmp.ne.s32.totalorder %s141_s17, %s215_s18  ;;  %p221_p10 = scmp.lt.s32.totalorder %s215_s18, %s215_s18 }
  0x44   :  { %p222_p11 = por %p221_p10, %p220_p9 }
  0x46   :  { %p223_p12 = pnand %p222_p11, %p216_p8 }
  0xde   :  { %v103_v32 = vpop.f32.mrb[0].mxu0 }
  0xdf   :  { %v104_v33 = vadd.f32 %v162_v31, %v103_v32  ;;  %v179_v34 = vpop.f32.mrb[1].mxu0 }
  0xe1   :  { %108 = vst.msk [vmem:[#allocation2] sm:$0xff] %vm107_vm3, %v104_v33 }
  0xe2   :  { %226 = shalt.err (!%p223_p12)
}
  0xe3   :  { %s227_s20 = scalar_lea.hbm %s325_s4, 128 }
  0xe4   :  { %p228_p13 = scmp.ne.s32.totalorder %s325_s4, %s227_s20  ;;  %p231_p0 = scmp.lt.u32.totalorder %s227_s20, %s325_s4 }
  0xe6   :  { %p233_p1 = pnand %p231_p0, %p228_p13 }
  0xe8   :  { %236 = shalt.err (!%p233_p1)
}
  0xe9   :  { %143 = dma.vmem_to_hbm [thread:$0]  %s141_s17, 128, %s325_s4, [#allocation3]  }
  0xea   :  { %237 = dma.done.wait [#allocation3], 128  }
  0xeb   :  { %238 = vsyncadd [#allocation3], 4294967168 }
  0xec   :  { %239 = dma.done.wait [#allocation5], 32  }
  0xed   :  { %240 = vsyncadd [#allocation5], 4294967264 }
  0xee   :  { %160 = vsyncpa [#allocation3], 1 }
  0xef   :  { %161 = vsyncpa [#allocation5], 1 }

// kernel: baseline_forward.4
= control target key start
LH: loop header
LB: loop body
LE: loop exit
PB: predicated region body
PF: predicated region fallthrough
CT: control target
= control target key end

     0   :  { %vm44_vm0 = vcmask 130048   ;;  %v179_v3 = vmov 0   ;;  %s246_s0 = inlined_call_operand.vmem [shape: f32[16,128], index: 0, kind: input, shape index: {}]   ;;  %s247_s1 = inlined_call_operand.vmem [shape: f32[32,16], index: 1, kind: input, shape index: {}]   ;;  %s248_s2 = inlined_call_operand.vmem [shape: f32[32,1], index: 2, kind: input, shape index: {}]   ;;  %s249_s3 = inlined_call_operand.vmem [shape: f32[32,128], index: 3, kind: output, shape index: {}]  }
   0x1   :  { %v18_v0 = vld [vmem:[%s246_s0] sm:$0xff]  ;;  %v19_v1 = vld [vmem:[%s246_s0 + $0x8] sm:$0xff]  ;;  %178 = vset.pattern.permute.xlu1 %v179_v3  ;;  %177 = vset.pattern.permute.xlu0 %v179_v3  ;;  %v16_v5 = vld [vmem:[%s247_s1 + $0x10] sm:$0xff] }
   0x2   :  { %v14_v2 = vld [vmem:[%s247_s1] sm:$0xff]  ;;  %v170_v4 = vpack.c.bf16 %v19_v1, %v18_v0  ;;  %167 = vmatprep.mubr.msk.f32.mxu1 %vm44_vm0, %v16_v5  ;;  %v22_v6 = vld [vmem:[%s248_s2 + $0x10] sm:$0xff]  ;;  %v15_v8 = vld [vmem:[%s247_s1 + $0x8] sm:$0xff] }
   0x3   :  { %164 = vmatprep.mubr.msk.f32.mxu0 %vm44_vm0, %v14_v2  ;;  %v20_v7 = vld [vmem:[%s248_s2] sm:$0xff]  ;;  %v17_v9 = vld [vmem:[%s247_s1 + $0x18] sm:$0xff]  ;;  %36 = vperm.xlu1 %178, %v22_v6   ;;  %v21_v11 = vld [vmem:[%s248_s2 + $0x8] sm:$0xff] }
   0x4   :  { %171 = vmatprep.subr.bf16.mxu0 %v170_v4  ;;  %174 = vmatprep.subr.bf16.mxu1 %v170_v4  ;;  %v23_v10 = vld [vmem:[%s248_s2 + $0x18] sm:$0xff] }
   0x5   :  { %173 = vmatpush3.bf16.msra.mxu0 %v170_v4  ;;  %175 = vmatpush3.bf16.msra.mxu1 %v170_v4 }
   0x6   :  { %26 = vperm.xlu0 %177, %v20_v7  }
   0x7   :  { %41 = vperm.xlu1 %178, %v23_v10  }
   0x8   :  { %165 = vmatmul.mubr.msk.f32.vlgmr.msra.gmra.mrb[0].mxu0 %vm44_vm0, %v15_v8  ;;  %168 = vmatmul.mubr.msk.f32.vlgmr.msra.gmra.mrb[0].mxu1 %vm44_vm0, %v17_v9 }
   0xa   :  { %31 = vperm.xlu0 %177, %v21_v11  }
  0x82   :  { %v37_v12 = vpop.permute.xlu1 %36 }
  0x85   :  { %v27_v13 = vpop.permute.xlu0 %26 }
  0x86   :  { %v42_v14 = vpop.permute.xlu1 %41 }
  0x89   :  { %v32_v15 = vpop.permute.xlu0 %31 }
  0xdb   :  { %v166_v16 = vpop.f32.mrb[0].mxu0  ;;  %v169_v17 = vpop.f32.mrb[0].mxu1 }
  0xdc   :  { %v129_v18 = vadd.f32 %v166_v16, %v32_v15  ;;  %v139_v19 = vadd.f32 %v169_v17, %v42_v14  ;;  %v123_v20 = vpop.f32.mrb[1].mxu0  ;;  %v133_v21 = vpop.f32.mrb[1].mxu1 }
  0xdd   :  { %v124_v22 = vadd.f32 %v123_v20, %v27_v13  ;;  %v134_v23 = vadd.f32 %v133_v21, %v37_v12 }
  0xde   :  { %143 = vst [vmem:[%s249_s3 + $0x8] sm:$0xff] %v129_v18  ;;  %145 = vst [vmem:[%s249_s3 + $0x18] sm:$0xff] %v139_v19 }
  0xdf   :  { %142 = vst [vmem:[%s249_s3] sm:$0xff] %v124_v22  ;;  %144 = vst [vmem:[%s249_s3 + $0x10] sm:$0xff] %v134_v23 }

</bundles_post_ra>
